<compile_context>
chip_gen: v5e
topology: v5e:2x2
jax: 0.10.0
libtpu: 0.0.40
codegen_flags: <defaults>
</compile_context>

<pallas_src>
import jax
import jax.numpy as jnp
from jax.experimental import pallas as pl
from jax.experimental.pallas import tpu as pltpu

HIDDEN = 1024
CHUNK = 256          # lane chunk for the fused layer-1/2 loop (multiple of 128)


def _round_up(x, m):
    return ((x + m - 1) // m) * m


def _critic_kernel(s_ref, a_ref, w1_ref, b1_ref, w2_ref, b2_ref, o_ref):
    """relu(cat(s,a) @ W1 + b1) . w2 + b2 for one batch tile, fused over HIDDEN."""
    # In-kernel lane concat + bf16 cast for the MXU; accumulate in f32.
    x = jnp.concatenate([s_ref[...], a_ref[...]], axis=-1).astype(jnp.bfloat16)
    tb = x.shape[0]

    # Fused layer-1 / layer-2 over 256-lane chunks of HIDDEN.  Keeps the live
    # set small (no (tile, 1024) f32 h spilled to VMEM and re-read) and pushes
    # 7/8 of the output reduction onto the VPU instead of the XLU.
    acc = jnp.zeros((tb, 128), jnp.float32)
    for j in range(0, HIDDEN, CHUNK):
        h = jnp.dot(x, w1_ref[:, j:j + CHUNK],
                    preferred_element_type=jnp.float32)           # MXU, (tb, CHUNK)
        h = jnp.maximum(h + b1_ref[:, j:j + CHUNK], 0.0)          # VPU
        hw = h * w2_ref[:, j:j + CHUNK]                           # VPU
        for k in range(0, CHUNK, 128):                            # fold to 128 lanes
            acc = acc + hw[:, k:k + 128]                          # VPU, aligned slices
    q = jnp.sum(acc, axis=-1, keepdims=True)                      # one XLU reduce
    o_ref[...] = q + b2_ref[0]                                    # scalar bias from SMEM


def _choose_tile(B, batch_tile):
    b8 = _round_up(B, 8)
    tile = min(_round_up(batch_tile, 8), b8)
    # v7x has 2 TensorCores per chip: once the batch is big enough, make sure
    # the grid has >= 2 steps so the "parallel" axis can shard across cores.
    if B >= 512:
        tile = min(tile, _round_up((b8 + 1) // 2, 8))
    return max(tile, 8)


def critic_forward(state, action, params, *, batch_tile=1024):
    """state: (B, state_dim), action: (B, action_dim) -> (B, 1) float32."""
    w1, b1, w2, b2 = params
    state = state.astype(jnp.float32)
    action = action.astype(jnp.float32)
    B, state_dim = state.shape
    _, action_dim = action.shape
    d_in = state_dim + action_dim
    assert w1.shape == (d_in, HIDDEN)

    tile = _choose_tile(B, batch_tile)
    Bp = _round_up(B, tile)
    if Bp != B:
        state = jnp.pad(state, ((0, Bp - B), (0, 0)))
        action = jnp.pad(action, ((0, Bp - B), (0, 0)))

    grid = (Bp // tile,)

    out = pl.pallas_call(
        _critic_kernel,
        out_shape=jax.ShapeDtypeStruct((Bp, 1), jnp.float32),
        grid_spec=pltpu.PrefetchScalarGridSpec(
            num_scalar_prefetch=0,
            grid=grid,
            in_specs=[
                # state / action: tiled over batch, full (small) feature dims.
                pl.BlockSpec((tile, state_dim), lambda i: (i, 0)),
                pl.BlockSpec((tile, action_dim), lambda i: (i, 0)),
                # Resident weights/biases: same block every step (~30 KB total).
                pl.BlockSpec((d_in, HIDDEN), lambda i: (0, 0)),
                pl.BlockSpec((1, HIDDEN), lambda i: (0, 0)),
                pl.BlockSpec((1, HIDDEN), lambda i: (0, 0)),
                # b2: scalar in SMEM (avoids a padded (8,128) VMEM tile + DMA).
                pl.BlockSpec(memory_space=pltpu.MemorySpace.SMEM),
            ],
            out_specs=pl.BlockSpec((tile, 1), lambda i: (i, 0)),
        ),
        compiler_params=pltpu.CompilerParams(
            dimension_semantics=("parallel",)),
    )(state, action, w1, b1, w2, b2)

    return out[:B]


def init_critic_params(key, state_dim, action_dim):
    """nn.Linear-style U(-1/sqrt(fan_in), 1/sqrt(fan_in)) init.

    W1 is stored as a single (d_in, HIDDEN) bf16 matrix (native MXU operand
    dtype, halves its VMEM/DMA); everything feeding the f32 VPU epilogue
    (b1, w2, b2) stays f32.
    """
    d_in = state_dim + action_dim
    k1, k2, k3, k4 = jax.random.split(key, 4)
    lim1 = 1.0 / jnp.sqrt(jnp.float32(d_in))
    lim2 = 1.0 / jnp.sqrt(jnp.float32(HIDDEN))
    w1 = jax.random.uniform(k1, (d_in, HIDDEN), jnp.float32,
                            -lim1, lim1).astype(jnp.bfloat16)
    b1 = jax.random.uniform(k2, (1, HIDDEN), jnp.float32, -lim1, lim1)
    w2 = jax.random.uniform(k3, (1, HIDDEN), jnp.float32, -lim2, lim2)   # row form
    b2 = jax.random.uniform(k4, (1,), jnp.float32, -lim2, lim2)
    return (w1, b1, w2, b2)


def critic_reference(state, action, params):
    """Pure-JAX reference mirroring the PyTorch forward (cat -> linear -> relu -> linear)."""
    w1, b1, w2, b2 = params
    x = jnp.concatenate([state, action], axis=1)
    h = jnp.maximum(x @ w1.astype(jnp.float32) + b1, 0.0)
    return h @ w2.T + b2


if __name__ == "__main__":
    key = jax.random.PRNGKey(0)
    k_p, k_s, k_a = jax.random.split(key, 3)

    # Small demo shapes consistent with the module.
    batch, state_dim, action_dim = 2, 8, 4
    params = init_critic_params(k_p, state_dim, action_dim)
    state = jax.random.normal(k_s, (batch, state_dim), jnp.float32)
    action = jax.random.normal(k_a, (batch, action_dim), jnp.float32)

    out = jax.block_until_ready(critic_forward(state, action, params))
    ref = critic_reference(state, action, params)
    assert out.shape == (batch, 1)
    # bf16 MXU operands with f32 accumulation: tolerance loosened accordingly.
    assert jnp.allclose(out, ref, atol=2e-2, rtol=2e-2), (out, ref)

    # Second check: padding, grid > 1, and the >=2-step (two-TensorCore) path.
    k_s2, k_a2 = jax.random.split(jax.random.PRNGKey(1))
    big_b = 600
    state2 = jax.random.normal(k_s2, (big_b, state_dim), jnp.float32)
    action2 = jax.random.normal(k_a2, (big_b, action_dim), jnp.float32)
    out2 = jax.block_until_ready(critic_forward(state2, action2, params))
    ref2 = critic_reference(state2, action2, params)
    assert out2.shape == (big_b, 1)
    assert jnp.allclose(out2, ref2, atol=2e-2, rtol=2e-2)

    print("KERNEL_OK")
</pallas_src>

<mosaic_0001>
module attributes {stable_mosaic.version = 11 : i64} {
  func.func @_critic_kernel(%arg0: i32, %arg1: memref<8x8xf32, #tpu.memory_space<vmem>>, %arg2: memref<8x4xf32, #tpu.memory_space<vmem>>, %arg3: memref<12x1024xbf16, #tpu.memory_space<vmem>>, %arg4: memref<1x1024xf32, #tpu.memory_space<vmem>>, %arg5: memref<1x1024xf32, #tpu.memory_space<vmem>>, %arg6: memref<1xf32, #tpu.memory_space<smem>>, %arg7: memref<8x1xf32, #tpu.memory_space<vmem>>) attributes {dimension_semantics = [#tpu.dimension_semantics<parallel>], iteration_bounds = array<i64: 1>, scalar_prefetch = 0 : i64, scratch_operands = 0 : i64, tpu.core_type = #tpu.core_type<tc>, window_params = [{transform_indices = @transform_0, window_bounds = array<i64: 8, 8>}, {transform_indices = @transform_1, window_bounds = array<i64: 8, 4>}, {pipeline_mode = #tpu.pipeline_mode<synchronous>, transform_indices = @transform_2, window_bounds = array<i64: 12, 1024>}, {pipeline_mode = #tpu.pipeline_mode<synchronous>, transform_indices = @transform_3, window_bounds = array<i64: 1, 1024>}, {pipeline_mode = #tpu.pipeline_mode<synchronous>, transform_indices = @transform_4, window_bounds = array<i64: 1, 1024>}, {transform_indices = @transform_5, window_bounds = array<i64: 1>}, {transform_indices = @transform_6, window_bounds = array<i64: 8, 1>}]} {
    %c0 = arith.constant 0 : index
    %c0_0 = arith.constant 0 : index
    %0 = vector.load %arg1[%c0, %c0_0] : memref<8x8xf32, #tpu.memory_space<vmem>>, vector<8x8xf32>
    %c0_1 = arith.constant 0 : index
    %c0_2 = arith.constant 0 : index
    %1 = vector.load %arg2[%c0_1, %c0_2] : memref<8x4xf32, #tpu.memory_space<vmem>>, vector<8x4xf32>
    %2 = tpu.concatenate %0, %1 in 1 : vector<8x8xf32>, vector<8x4xf32> -> vector<8x12xf32>
    %3 = arith.truncf %2 : vector<8x12xf32> to vector<8x12xbf16>
    %cst = arith.constant 0.000000e+00 : f32
    %4 = vector.broadcast %cst : f32 to vector<8x128xf32>
    %c0_3 = arith.constant 0 : index
    %c0_4 = arith.constant 0 : index
    %5 = vector.load %arg3[%c0_3, %c0_4] : memref<12x1024xbf16, #tpu.memory_space<vmem>>, vector<12x256xbf16>
    %cst_5 = arith.constant dense<0.000000e+00> : vector<8x256xf32>
    %6 = tpu.matmul %3, %5, %cst_5 {dimension_numbers = #tpu.dot_dimension_numbers<[1], [0], [0], [1], [0, 0, 1, 1], [], []>} : vector<8x12xbf16>, vector<12x256xbf16>, vector<8x256xf32> -> vector<8x256xf32>
    %c0_6 = arith.constant 0 : index
    %c0_7 = arith.constant 0 : index
    %7 = vector.load %arg4[%c0_6, %c0_7] : memref<1x1024xf32, #tpu.memory_space<vmem>>, vector<1x256xf32>
    %8 = vector.broadcast %7 : vector<1x256xf32> to vector<8x256xf32>
    %9 = arith.addf %6, %8 : vector<8x256xf32>
    %cst_8 = arith.constant 0.000000e+00 : f32
    %10 = vector.broadcast %cst_8 : f32 to vector<8x256xf32>
    %11 = arith.maximumf %9, %10 : vector<8x256xf32>
    %c0_9 = arith.constant 0 : index
    %c0_10 = arith.constant 0 : index
    %12 = vector.load %arg5[%c0_9, %c0_10] : memref<1x1024xf32, #tpu.memory_space<vmem>>, vector<1x256xf32>
    %13 = vector.broadcast %12 : vector<1x256xf32> to vector<8x256xf32>
    %14 = arith.mulf %11, %13 : vector<8x256xf32>
    %15 = vector.extract_strided_slice %14 {offsets = [0, 0], sizes = [8, 128], strides = [1, 1]} : vector<8x256xf32> to vector<8x128xf32>
    %16 = arith.addf %4, %15 : vector<8x128xf32>
    %17 = vector.extract_strided_slice %14 {offsets = [0, 128], sizes = [8, 128], strides = [1, 1]} : vector<8x256xf32> to vector<8x128xf32>
    %18 = arith.addf %16, %17 : vector<8x128xf32>
    %c0_11 = arith.constant 0 : index
    %c256 = arith.constant 256 : index
    %19 = vector.load %arg3[%c0_11, %c256] : memref<12x1024xbf16, #tpu.memory_space<vmem>>, vector<12x256xbf16>
    %cst_12 = arith.constant dense<0.000000e+00> : vector<8x256xf32>
    %20 = tpu.matmul %3, %19, %cst_12 {dimension_numbers = #tpu.dot_dimension_numbers<[1], [0], [0], [1], [0, 0, 1, 1], [], []>} : vector<8x12xbf16>, vector<12x256xbf16>, vector<8x256xf32> -> vector<8x256xf32>
    %c0_13 = arith.constant 0 : index
    %c256_14 = arith.constant 256 : index
    %21 = vector.load %arg4[%c0_13, %c256_14] : memref<1x1024xf32, #tpu.memory_space<vmem>>, vector<1x256xf32>
    %22 = vector.broadcast %21 : vector<1x256xf32> to vector<8x256xf32>
    %23 = arith.addf %20, %22 : vector<8x256xf32>
    %cst_15 = arith.constant 0.000000e+00 : f32
    %24 = vector.broadcast %cst_15 : f32 to vector<8x256xf32>
    %25 = arith.maximumf %23, %24 : vector<8x256xf32>
    %c0_16 = arith.constant 0 : index
    %c256_17 = arith.constant 256 : index
    %26 = vector.load %arg5[%c0_16, %c256_17] : memref<1x1024xf32, #tpu.memory_space<vmem>>, vector<1x256xf32>
    %27 = vector.broadcast %26 : vector<1x256xf32> to vector<8x256xf32>
    %28 = arith.mulf %25, %27 : vector<8x256xf32>
    %29 = vector.extract_strided_slice %28 {offsets = [0, 0], sizes = [8, 128], strides = [1, 1]} : vector<8x256xf32> to vector<8x128xf32>
    %30 = arith.addf %18, %29 : vector<8x128xf32>
    %31 = vector.extract_strided_slice %28 {offsets = [0, 128], sizes = [8, 128], strides = [1, 1]} : vector<8x256xf32> to vector<8x128xf32>
    %32 = arith.addf %30, %31 : vector<8x128xf32>
    %c0_18 = arith.constant 0 : index
    %c512 = arith.constant 512 : index
    %33 = vector.load %arg3[%c0_18, %c512] : memref<12x1024xbf16, #tpu.memory_space<vmem>>, vector<12x256xbf16>
    %cst_19 = arith.constant dense<0.000000e+00> : vector<8x256xf32>
    %34 = tpu.matmul %3, %33, %cst_19 {dimension_numbers = #tpu.dot_dimension_numbers<[1], [0], [0], [1], [0, 0, 1, 1], [], []>} : vector<8x12xbf16>, vector<12x256xbf16>, vector<8x256xf32> -> vector<8x256xf32>
    %c0_20 = arith.constant 0 : index
    %c512_21 = arith.constant 512 : index
    %35 = vector.load %arg4[%c0_20, %c512_21] : memref<1x1024xf32, #tpu.memory_space<vmem>>, vector<1x256xf32>
    %36 = vector.broadcast %35 : vector<1x256xf32> to vector<8x256xf32>
    %37 = arith.addf %34, %36 : vector<8x256xf32>
    %cst_22 = arith.constant 0.000000e+00 : f32
    %38 = vector.broadcast %cst_22 : f32 to vector<8x256xf32>
    %39 = arith.maximumf %37, %38 : vector<8x256xf32>
    %c0_23 = arith.constant 0 : index
    %c512_24 = arith.constant 512 : index
    %40 = vector.load %arg5[%c0_23, %c512_24] : memref<1x1024xf32, #tpu.memory_space<vmem>>, vector<1x256xf32>
    %41 = vector.broadcast %40 : vector<1x256xf32> to vector<8x256xf32>
    %42 = arith.mulf %39, %41 : vector<8x256xf32>
    %43 = vector.extract_strided_slice %42 {offsets = [0, 0], sizes = [8, 128], strides = [1, 1]} : vector<8x256xf32> to vector<8x128xf32>
    %44 = arith.addf %32, %43 : vector<8x128xf32>
    %45 = vector.extract_strided_slice %42 {offsets = [0, 128], sizes = [8, 128], strides = [1, 1]} : vector<8x256xf32> to vector<8x128xf32>
    %46 = arith.addf %44, %45 : vector<8x128xf32>
    %c0_25 = arith.constant 0 : index
    %c768 = arith.constant 768 : index
    %47 = vector.load %arg3[%c0_25, %c768] : memref<12x1024xbf16, #tpu.memory_space<vmem>>, vector<12x256xbf16>
    %cst_26 = arith.constant dense<0.000000e+00> : vector<8x256xf32>
    %48 = tpu.matmul %3, %47, %cst_26 {dimension_numbers = #tpu.dot_dimension_numbers<[1], [0], [0], [1], [0, 0, 1, 1], [], []>} : vector<8x12xbf16>, vector<12x256xbf16>, vector<8x256xf32> -> vector<8x256xf32>
    %c0_27 = arith.constant 0 : index
    %c768_28 = arith.constant 768 : index
    %49 = vector.load %arg4[%c0_27, %c768_28] : memref<1x1024xf32, #tpu.memory_space<vmem>>, vector<1x256xf32>
    %50 = vector.broadcast %49 : vector<1x256xf32> to vector<8x256xf32>
    %51 = arith.addf %48, %50 : vector<8x256xf32>
    %cst_29 = arith.constant 0.000000e+00 : f32
    %52 = vector.broadcast %cst_29 : f32 to vector<8x256xf32>
    %53 = arith.maximumf %51, %52 : vector<8x256xf32>
    %c0_30 = arith.constant 0 : index
    %c768_31 = arith.constant 768 : index
    %54 = vector.load %arg5[%c0_30, %c768_31] : memref<1x1024xf32, #tpu.memory_space<vmem>>, vector<1x256xf32>
    %55 = vector.broadcast %54 : vector<1x256xf32> to vector<8x256xf32>
    %56 = arith.mulf %53, %55 : vector<8x256xf32>
    %57 = vector.extract_strided_slice %56 {offsets = [0, 0], sizes = [8, 128], strides = [1, 1]} : vector<8x256xf32> to vector<8x128xf32>
    %58 = arith.addf %46, %57 : vector<8x128xf32>
    %59 = vector.extract_strided_slice %56 {offsets = [0, 128], sizes = [8, 128], strides = [1, 1]} : vector<8x256xf32> to vector<8x128xf32>
    %60 = arith.addf %58, %59 : vector<8x128xf32>
    %cst_32 = arith.constant dense<0.000000e+00> : vector<8xf32>
    %61 = vector.multi_reduction <add>, %60, %cst_32 [1] : vector<8x128xf32> to vector<8xf32>
    %62 = vector.shape_cast %61 : vector<8xf32> to vector<8x1xf32>
    %c0_33 = arith.constant 0 : index
    %63 = memref.load %arg6[%c0_33] : memref<1xf32, #tpu.memory_space<smem>>
    %64 = vector.broadcast %63 : f32 to vector<8x1xf32>
    %65 = arith.addf %62, %64 : vector<8x1xf32>
    %c0_34 = arith.constant 0 : index
    %c0_35 = arith.constant 0 : index
    %66 = vector.load %arg7[%c0_34, %c0_35] : memref<8x1xf32, #tpu.memory_space<vmem>>, vector<8x1xf32>
    tpu.vector_store %arg7[%c0_34, %c0_35], %65 {strides = array<i32>} : memref<8x1xf32, #tpu.memory_space<vmem>>, vector<8x1xf32>,
    return
  }
  func.func @transform_0(%arg0: i32) -> (i32, i32) {
    %c0_i32 = arith.constant 0 : i32
    %c0_i32_0 = arith.constant 0 : i32
    return %arg0, %c0_i32 : i32, i32
  }
  func.func @transform_1(%arg0: i32) -> (i32, i32) {
    %c0_i32 = arith.constant 0 : i32
    %c0_i32_0 = arith.constant 0 : i32
    return %arg0, %c0_i32 : i32, i32
  }
  func.func @transform_2(%arg0: i32) -> (i32, i32) {
    %c0_i32 = arith.constant 0 : i32
    %c0_i32_0 = arith.constant 0 : i32
    %c0_i32_1 = arith.constant 0 : i32
    return %c0_i32, %c0_i32_0 : i32, i32
  }
  func.func @transform_3(%arg0: i32) -> (i32, i32) {
    %c0_i32 = arith.constant 0 : i32
    %c0_i32_0 = arith.constant 0 : i32
    %c0_i32_1 = arith.constant 0 : i32
    return %c0_i32, %c0_i32_0 : i32, i32
  }
  func.func @transform_4(%arg0: i32) -> (i32, i32) {
    %c0_i32 = arith.constant 0 : i32
    %c0_i32_0 = arith.constant 0 : i32
    %c0_i32_1 = arith.constant 0 : i32
    return %c0_i32, %c0_i32_0 : i32, i32
  }
  func.func @transform_5(%arg0: i32) -> i32 {
    %c0_i32 = arith.constant 0 : i32
    %c0_i32_0 = arith.constant 0 : i32
    return %c0_i32 : i32
  }
  func.func @transform_6(%arg0: i32) -> (i32, i32) {
    %c0_i32 = arith.constant 0 : i32
    %c0_i32_0 = arith.constant 0 : i32
    return %arg0, %c0_i32 : i32, i32
  }
}

</mosaic_0001>

<bundles_post_ra>
// kernel: tpu_custom_call.1
= control target key start
LH: loop header
LB: loop body
LE: loop exit
PB: predicated region body
PF: predicated region fallthrough
CT: control target
= control target key end

     0   :  { %12 = vsyncpa [#allocation4], 0  ;;  %s505_s0 = inlined_call_operand.vmem [shape: f32[8,8], index: 0, kind: input, shape index: {}]   ;;  %s506_s1 = inlined_call_operand.vmem [shape: f32[8,4], index: 1, kind: input, shape index: {}]   ;;  %s507_s2 = inlined_call_operand.hbm [shape: bf16[12,1024], index: 2, kind: input, shape index: {}]   ;;  %s508_s3 = inlined_call_operand.vmem [shape: f32[1,1024], index: 3, kind: input, shape index: {}]   ;;  %s509_s4 = inlined_call_operand.hbm [shape: f32[1,1024], index: 4, kind: input, shape index: {}]   ;;  %s510_s5 = inlined_call_operand.<no memory space> [shape: f32[1], index: 5, kind: input, shape index: {}]   ;;  %s511_s6 = inlined_call_operand.vmem [shape: f32[8,1], index: 6, kind: output, shape index: {}]  }
   0x1   :  { %s22_s23 = sshll.u32 %s507_s2, 4  ;;  %s23_s23 = int_to_ptr.hbm [resolvable:$true] %s22_s23 }
   0x2   :  { %13 = vsyncpa [#allocation6], 0  ;;  %s427_s24 = smov [#allocation3]   ;;  %s38_s28 = sshll.u32 %s509_s4, 4  ;;  %s39_s28 = int_to_ptr.hbm [resolvable:$true] %s38_s28 }
   0x3   :  { %s24_s25 = sshll.u32 %s427_s24, 4  ;;  %s428_s29 = smov 512   ;;  %s25_s25 = int_to_ptr.vmem [resolvable:$true] %s24_s25 }
   0x4   :  { %s429_s30 = smov 32   ;;  %s430_s7 = smov [#allocation5]  }
   0x5   :  { %30 = dma.hbm_to_vmem [thread:$0]  %s23_s23, 1024, %s25_s25, [#allocation4], %s428_s29, %s428_s29, %s429_s30  }
   0x6   :  { %s40_s8 = sshll.u32 %s430_s7, 4  ;;  %s41_s8 = int_to_ptr.vmem [resolvable:$true] %s40_s8 }
   0x7   :  { %43 = dma.hbm_to_vmem [thread:$0]  %s39_s28, 128, %s41_s8, [#allocation6]  }
   0x8   :  { %423 = dma.done.wait [#allocation4], 1024  }
   0x9   :  { %424 = vsyncadd [#allocation4], 4294966272 }
   0xa   :  { %425 = dma.done.wait [#allocation6], 128  }
   0xb   :  { %426 = vsyncadd [#allocation6], 4294967168  ;;  %v56_v0 = vld [vmem:[%s506_s1] sm:$0xff]  ;;  %s431_s10 = smov 8   ;;  %v334_v6 = vld [vmem:[#allocation3 + $0x8] sm:$0xf] }
   0xc   :  { %58 = vrot.lane.b32.xlu0 %v56_v0, %s431_s10  ;;  %v324_v1 = vld [vmem:[#allocation3] sm:$0xf]  ;;  %v362_v3 = vld [vmem:[#allocation3 + $0x4] sm:$0xf]  ;;  %v365_v7 = vld [vmem:[#allocation3 + $0x24] sm:$0x30] }
   0xd   :  { %v363_v2 = vld [vmem:[#allocation3 + $0x1c] sm:$0x30]  ;;  %v326_v5 = vld [vmem:[#allocation3 + $0x20] sm:$0x30]  ;;  %vm84_vm0 = vcmask 1045504   ;;  %v335_v9 = vor.u32 %v365_v7, %v334_v6  ;;  %vm61_vm1 = vcmask 64512  }
   0xe   :  { %v325_v4 = vor.u32 %v363_v2, %v324_v1  ;;  %v329_v8 = vor.u32 %v362_v3, %v326_v5  ;;  %v364_v10 = vld [vmem:[#allocation3 + $0xc] sm:$0xf]  ;;  %v354_v17 = vld [vmem:[#allocation3 + $0x18] sm:$0xf]  ;;  %v344_v19 = vld [vmem:[#allocation3 + $0x10] sm:$0xf] }
   0xf   :  { %v336_v11 = vld [vmem:[#allocation3 + $0x28] sm:$0x30]  ;;  %v146_v15 = vsel %vm84_vm0, %v335_v9, 0  ;;  %v369_v18 = vld [vmem:[#allocation3 + $0x34] sm:$0x30]  ;;  %v55_v33 = vld [vmem:[%s505_s0] sm:$0xff] }
  0x10   :  { %v86_v12 = vsel %vm84_vm0, %v325_v4, 0  ;;  %v339_v13 = vor.u32 %v364_v10, %v336_v11  ;;  %v89_v14 = vsel %vm84_vm0, %v329_v8, 0  ;;  %158 = vmatpush.bf16.msra.mxu2 %v146_v15  ;;  %v355_v20 = vor.u32 %v369_v18, %v354_v17  ;;  %v367_v21 = vld [vmem:[#allocation3 + $0x2c] sm:$0x30]  ;;  %v368_v22 = vld [vmem:[#allocation3 + $0x1c] sm:$0xf] }
  0x11   :  { %98 = vmatpush.bf16.msra.mxu0 %v86_v12  ;;  %111 = vmatpush.bf16.msra.mxu1 %v89_v14  ;;  %v356_v23 = vld [vmem:[#allocation3 + $0x38] sm:$0x30]  ;;  %v345_v24 = vor.u32 %v367_v21, %v344_v19  ;;  %v366_v26 = vld [vmem:[#allocation3 + $0x14] sm:$0xf]  ;;  %vm80_vm2 = vcmask 97280   ;;  %vm314_vm3 = vcmask 7168  }
  0x12   :  { %v149_v16 = vsel %vm84_vm0, %v339_v13, 0  ;;  %v359_v25 = vor.u32 %v368_v22, %v356_v23  ;;  %v346_v27 = vld [vmem:[#allocation3 + $0x30] sm:$0x30]  ;;  %v266_v28 = vsel %vm84_vm0, %v355_v20, 0  ;;  %v66_v37 = vld [vmem:[%s508_s3] sm:$0x3] }
  0x13   :  { %171 = vmatpush.bf16.msra.mxu3 %v149_v16  ;;  %v349_v29 = vor.u32 %v366_v26, %v346_v27  ;;  %v206_v30 = vsel %vm84_vm0, %v345_v24, 0  ;;  %v68_v38 = vperm.slane %v66_v37, 0  ;;  %v69_v40 = vperm.slane %v66_v37, 1  ;;  %v131_v42 = vld [vmem:[%s508_s3 + $0x2] sm:$0x3] }
  0x14   :  { %278 = vmatpush.bf16.msrb.mxu2 %v266_v28  ;;  %v269_v31 = vsel %vm84_vm0, %v359_v25, 0  ;;  %v119_v44 = vld [vmem:[#allocation5] sm:$0x3]  ;;  %v133_v46 = vperm.slane %v131_v42, 0  ;;  %v179_v50 = vld [vmem:[#allocation5 + $0x2] sm:$0x3] }
  0x15   :  { %218 = vmatpush.bf16.msrb.mxu0 %v206_v30  ;;  %v209_v32 = vsel %vm84_vm0, %v349_v29, 0  ;;  %v121_v47 = vperm.slane %v119_v44, 0  ;;  %v122_v48 = vperm.slane %v119_v44, 1  ;;  %v134_v55 = vperm.slane %v131_v42, 1  ;;  %v191_v60 = vld [vmem:[%s508_s3 + $0x4] sm:$0x3] }
  0x16   :  { %231 = vmatpush.bf16.msrb.mxu1 %v209_v32  ;;  %v181_v59 = vperm.slane %v179_v50, 0  ;;  %v193_v0 = vperm.slane %v191_v60, 0  ;;  %v239_v2 = vld [vmem:[#allocation5 + $0x4] sm:$0x3]  ;;  %v194_v3 = vperm.slane %v191_v60, 1  ;;  %v182_v8 = vperm.slane %v179_v50, 1 }
  0x17   :  { %291 = vmatpush.bf16.msrb.mxu3 %v269_v31  ;;  %v241_v12 = vperm.slane %v239_v2, 0  ;;  %v251_v13 = vld [vmem:[%s508_s3 + $0x6] sm:$0x3]  ;;  %v242_v24 = vperm.slane %v239_v2, 1  ;;  %v312_v44 = vstv %s510_s5 }
  0x18   :  { %v253_v18 = vperm.slane %v251_v13, 0  ;;  %v254_v19 = vperm.slane %v251_v13, 1  ;;  %v299_v21 = vld [vmem:[#allocation5 + $0x6] sm:$0x3] }
  0x19   :  { %v301_v29 = vperm.slane %v299_v21, 0 }
  0x7e   :  { %v59_v34 = vpop.permute.xlu0 %58 }
  0x7f   :  { %v62_v35 = vsel %vm61_vm1, %v55_v33, %v59_v34 }
  0x80   :  { %v63_v36 = vpack.c.bf16 %v62_v35, %v62_v35 }
  0x82   :  { %330 = vmatmul.msk.bf16.vlgmr.msra.gmra.mxu0 %vm80_vm2, %v63_v36  ;;  %331 = vmatmul.msk.bf16.vlgmr.msra.gmra.mxu1 %vm80_vm2, %v63_v36 }
  0x83   :  { %340 = vmatmul.msk.bf16.vlgmr.msra.gmra.mxu2 %vm80_vm2, %v63_v36  ;;  %341 = vmatmul.msk.bf16.vlgmr.msra.gmra.mxu3 %vm80_vm2, %v63_v36 }
  0x92   :  { %350 = vmatmul.msk.bf16.vlgmr.msrb.gmra.mxu0 %vm80_vm2, %v63_v36  ;;  %351 = vmatmul.msk.bf16.vlgmr.msrb.gmra.mxu1 %vm80_vm2, %v63_v36 }
  0x93   :  { %360 = vmatmul.msk.bf16.vlgmr.msrb.gmra.mxu2 %vm80_vm2, %v63_v36  ;;  %361 = vmatmul.msk.bf16.vlgmr.msrb.gmra.mxu3 %vm80_vm2, %v63_v36  ;;  %v302_v36 = vperm.slane %v299_v21, 1 }
  0xff   :  { %v100_v39 = vpop.f32.mrf.mxu0  ;;  %v113_v41 = vpop.f32.mrf.mxu1 }
 0x100   :  { %v101_v43 = vadd.f32 %v100_v39, %v68_v38  ;;  %v114_v45 = vadd.f32 %v113_v41, %v69_v40 }
 0x102   :  { %v117_v52 = vmax.f32 %v101_v43, 0.0  ;;  %v118_v53 = vmax.f32 %v114_v45, 0.0 }
 0x104   :  { %v125_v61 = vmul.f32 %v121_v47, %v117_v52  ;;  %v126_v62 = vmul.f32 %v122_v48, %v118_v53 }
 0x106   :  { %v160_v49 = vpop.f32.mrf.mxu2  ;;  %v173_v51 = vpop.f32.mrf.mxu3  ;;  %v128_v6 = vadd.f32 %v126_v62, %v125_v61 }
 0x107   :  { %v161_v54 = vadd.f32 %v160_v49, %v133_v46  ;;  %v102_v56 = vpop.f32.mrf.mxu0  ;;  %v115_v57 = vpop.f32.mrf.mxu1  ;;  %v174_v63 = vadd.f32 %v173_v51, %v134_v55 }
 0x109   :  { %v177_v58 = vmax.f32 %v161_v54, 0.0  ;;  %v178_v7 = vmax.f32 %v174_v63, 0.0 }
 0x10b   :  { %v185_v1 = vmul.f32 %v181_v59, %v177_v58  ;;  %v186_v17 = vmul.f32 %v182_v8, %v178_v7 }
 0x10d   :  { %v187_v14 = vadd.f32 %v185_v1, %v128_v6 }
 0x10e   :  { %v162_v4 = vpop.f32.mrf.mxu2  ;;  %v175_v5 = vpop.f32.mrf.mxu3 }
 0x10f   :  { %v220_v9 = vpop.f32.mrf.mxu0  ;;  %v233_v10 = vpop.f32.mrf.mxu1  ;;  %v188_v22 = vadd.f32 %v187_v14, %v186_v17 }
 0x110   :  { %v221_v11 = vadd.f32 %v220_v9, %v193_v0  ;;  %v234_v15 = vadd.f32 %v233_v10, %v194_v3 }
 0x112   :  { %v237_v16 = vmax.f32 %v221_v11, 0.0  ;;  %v238_v23 = vmax.f32 %v234_v15, 0.0 }
 0x114   :  { %v245_v20 = vmul.f32 %v241_v12, %v237_v16  ;;  %v246_v33 = vmul.f32 %v242_v24, %v238_v23 }
 0x116   :  { %v280_v25 = vpop.f32.mrf.mxu2  ;;  %v293_v26 = vpop.f32.mrf.mxu3  ;;  %v247_v27 = vadd.f32 %v245_v20, %v188_v22 }
 0x117   :  { %v281_v28 = vadd.f32 %v280_v25, %v253_v18  ;;  %v294_v30 = vadd.f32 %v293_v26, %v254_v19  ;;  %v222_v31 = vpop.f32.mrf.mxu0  ;;  %v235_v32 = vpop.f32.mrf.mxu1 }
 0x118   :  { %v248_v37 = vadd.f32 %v247_v27, %v246_v33 }
 0x119   :  { %v297_v34 = vmax.f32 %v281_v28, 0.0  ;;  %v298_v35 = vmax.f32 %v294_v30, 0.0 }
 0x11b   :  { %v305_v38 = vmul.f32 %v301_v29, %v297_v34  ;;  %v306_v39 = vmul.f32 %v302_v36, %v298_v35 }
 0x11d   :  { %v307_v40 = vadd.f32 %v305_v38, %v248_v37 }
 0x11e   :  { %v282_v41 = vpop.f32.mrf.mxu2  ;;  %v295_v42 = vpop.f32.mrf.mxu3 }
 0x11f   :  { %v308_v43 = vadd.f32 %v307_v40, %v306_v39 }
 0x121   :  { %309 = vadd.xlane.f32.xlu0 %v308_v43 }
 0x194   :  { %v310_v45 = vpop.xlane.xlu0 %309 }
 0x195   :  { %v313_v46 = vadd.f32 %v312_v44, %v310_v45 }
 0x197   :  { %315 = vst.msk [vmem:[%s511_s6] sm:$0xff] %vm314_vm3, %v313_v46 }
 0x198   :  { %320 = vsyncpa [#allocation4], 1 }
 0x199   :  { %321 = vsyncpa [#allocation6], 1 }

</bundles_post_ra>
